<compile_context>
chip_gen: v5e
topology: v5e:2x2
jax: 0.10.0
libtpu: 0.0.40
codegen_flags: <defaults>
</compile_context>

<pallas_src>
import jax
import jax.numpy as jnp
from jax.experimental import pallas as pl
from jax.experimental.pallas import tpu as pltpu


def _round_up(x, m):
    return ((x + m - 1) // m) * m


def classifier_kernel(x_ref, w1_ref, b1_ref, w2_ref, b2_ref, o_ref):
    """One batch tile; the whole layer stack stays VMEM-resident.

    x_ref:  [TB, Dp]   f32 (or bf16) flattened input tile, cast to bf16 in-register
    w1_ref: [Dp, Hp]   bf16 fc1 weight ([in, out] layout, zero-padded)
    b1_ref: [1,  Hp]   f32  fc1 bias (zero-padded)
    w2_ref: [Hp, Op]   bf16 output weight ([in, out] layout, zero-padded)
    b2_ref: [1,  Op]   f32  output bias (-1e30 in the padded columns)
    o_ref:  [TB, Op]   f32  log-probabilities (padded cols are garbage, sliced off)
    """
    # In-kernel bf16 cast (VPU, hidden under the x DMA); f32 MXU accumulation.
    x = x_ref[...].astype(jnp.bfloat16)
    h = jnp.dot(x, w1_ref[...], preferred_element_type=jnp.float32)
    h = jnp.maximum(h + b1_ref[...], 0.0)

    # TODO(synk): nn.Dropout(p=0.5) is identity in eval mode; training-mode RNG
    # dropout (pltpu.prng_seed / prng_random_bits) is intentionally omitted.

    # Output linear (bf16 MXU matmul, f32 accumulate). Padded logit columns carry
    # bias -1e30 so they vanish from the softmax normalizer (sound in f32).
    z = jnp.dot(h.astype(jnp.bfloat16), w2_ref[...],
                preferred_element_type=jnp.float32) + b2_ref[...]

    # Numerically stable log_softmax along the lane-dense (128-wide) last axis.
    m = jnp.max(z, axis=-1, keepdims=True)
    shifted = z - m
    lse = jnp.log(jnp.sum(jnp.exp(shifted), axis=-1, keepdims=True))
    o_ref[...] = (shifted - lse).astype(o_ref.dtype)


def prepare_params(w1, b1, w2, b2):
    """One-time pad + bf16 cast of the parameters (hoisted out of the forward path)."""
    D, H = w1.shape
    O = w2.shape[1]
    Dp, Hp, Op = _round_up(D, 128), _round_up(H, 128), _round_up(O, 128)
    w1_p = jnp.zeros((Dp, Hp), jnp.bfloat16).at[:D, :H].set(w1.astype(jnp.bfloat16))
    b1_p = jnp.zeros((1, Hp), jnp.float32).at[0, :H].set(b1.astype(jnp.float32))
    w2_p = jnp.zeros((Hp, Op), jnp.bfloat16).at[:H, :O].set(w2.astype(jnp.bfloat16))
    b2_p = jnp.full((1, Op), -1e30, jnp.float32).at[0, :O].set(b2.astype(jnp.float32))
    return w1_p, b1_p, w2_p, b2_p


def _batch_tile(B):
    if B <= 8:
        return B  # single full-array block (block dim == array dim is allowed)
    # >=2 grid steps so the v7x megacore "parallel" split engages; cap tiles at 512
    # rows (512x1024 f32 x-tile = 2 MiB, 4 MiB double-buffered -> fits every gen).
    return min(512, _round_up(pl.cdiv(B, 2), 8))


def classifier_forward(x, w1_p, b1_p, w2_p, b2_p, output_size):
    """x: [B, ...] (flattened to [B, D]). Returns [B, output_size] f32 log-probs."""
    B = x.shape[0]
    x2d = x.reshape(B, -1)
    D = x2d.shape[1]
    Dp, Hp = w1_p.shape
    Op = w2_p.shape[1]

    # Only pad the feature axis if it is not lane-aligned (no-op when D % 128 == 0;
    # if the producer already emits bf16 activations the x DMA halves automatically).
    if D != Dp:
        x2d = jnp.zeros((B, Dp), x2d.dtype).at[:, :D].set(x2d)

    TB = _batch_tile(B)
    n_b = pl.cdiv(B, TB)  # ragged grid: last block may be partial, writes are masked

    # VMEM budget: x/out tiles double-buffered + resident weights/biases, 2x headroom.
    xbytes = jnp.dtype(x2d.dtype).itemsize
    vmem_need = (2 * TB * Dp * xbytes + 2 * TB * Op * 4
                 + Dp * Hp * 2 + Hp * Op * 2 + (Hp + Op) * 4)
    vmem_limit = int(min(max(2 * vmem_need, 16 * 1024 * 1024), 48 * 1024 * 1024))

    # TODO(synk): for very large D (w1 block >~ 16 MiB) add a K grid axis
    # ("arbitrary", reduction last) with an f32 acc scratch and single-buffer the
    # resident weight specs (pipeline_mode=pl.Buffered(1)) to fit v7x's 64 MiB VMEM.
    out_p = pl.pallas_call(
        classifier_kernel,
        out_shape=jax.ShapeDtypeStruct((B, Op), jnp.float32),
        grid=(n_b,),
        in_specs=[
            pl.BlockSpec((TB, Dp), lambda i: (i, 0)),   # x tile marches over batch
            pl.BlockSpec((Dp, Hp), lambda i: (0, 0)),   # w1 resident across tiles
            pl.BlockSpec((1, Hp), lambda i: (0, 0)),    # b1
            pl.BlockSpec((Hp, Op), lambda i: (0, 0)),   # w2
            pl.BlockSpec((1, Op), lambda i: (0, 0)),    # b2
        ],
        out_specs=pl.BlockSpec((TB, Op), lambda i: (i, 0)),
        compiler_params=pltpu.CompilerParams(
            dimension_semantics=("parallel",),          # megacore split on v7x
            vmem_limit_bytes=vmem_limit,
        ),
    )(x2d, w1_p, b1_p, w2_p, b2_p)

    # Lane-dense [B, 128] store in the kernel; slice back to the real output size.
    return out_p[:, :output_size]


def init_params(key, input_size, hidden_units, output_size):
    """Deterministic synthetic init mirroring nn.Linear shapes.

    PyTorch stores Linear weight as [out, in]; we keep the transposed [in, out]
    layout for the kernel (same math: y = x @ W_t + b).
    """
    k1, k2, k3, k4 = jax.random.split(key, 4)
    bound1 = 1.0 / jnp.sqrt(input_size)
    bound2 = 1.0 / jnp.sqrt(hidden_units)
    w1 = jax.random.uniform(k1, (input_size, hidden_units), jnp.float32, -bound1, bound1)
    b1 = jax.random.uniform(k2, (hidden_units,), jnp.float32, -bound1, bound1)
    w2 = jax.random.uniform(k3, (hidden_units, output_size), jnp.float32, -bound2, bound2)
    b2 = jax.random.uniform(k4, (output_size,), jnp.float32, -bound2, bound2)
    return w1, b1, w2, b2


if __name__ == "__main__":
    # Small shapes: batch=2, channels=4, spatial=16 -> input_size = 4*16*16 = 1024
    B, C, Hs, Ws = 2, 4, 16, 16
    input_size = C * Hs * Ws
    hidden_units = 128
    output_size = 10

    key = jax.random.PRNGKey(0)
    kx, kp = jax.random.split(key)
    x = jax.random.normal(kx, (B, C, Hs, Ws), jnp.float32)
    w1, b1, w2, b2 = init_params(kp, input_size, hidden_units, output_size)

    # One-time parameter prep (padding + bf16 cast) hoisted out of the forward path.
    w1_p, b1_p, w2_p, b2_p = prepare_params(w1, b1, w2, b2)

    out = classifier_forward(x, w1_p, b1_p, w2_p, b2_p, output_size)
    out = jax.block_until_ready(out)
    assert out.shape == (B, output_size)
    assert bool(jnp.all(jnp.isfinite(out)))

    # Reference with the same bf16-matmul / f32-accumulate precision path.
    x2d = x.reshape(B, -1)
    h_ref = jnp.maximum(
        jnp.dot(x2d.astype(jnp.bfloat16), w1.astype(jnp.bfloat16),
                preferred_element_type=jnp.float32) + b1, 0.0)
    z_ref = jnp.dot(h_ref.astype(jnp.bfloat16), w2.astype(jnp.bfloat16),
                    preferred_element_type=jnp.float32) + b2
    ref = jax.nn.log_softmax(z_ref, axis=1)
    assert jnp.allclose(out, ref, atol=5e-3, rtol=5e-3), "mismatch vs reference"

    # Loose check vs. the full-f32 reference (bf16 weight quantization only).
    h32 = jnp.maximum(x2d @ w1 + b1, 0.0)
    ref32 = jax.nn.log_softmax(h32 @ w2 + b2, axis=1)
    assert jnp.allclose(out, ref32, atol=5e-2), "mismatch vs f32 reference"

    print("KERNEL_OK")
</pallas_src>

<mosaic_0001>
module attributes {stable_mosaic.version = 11 : i64} {
  func.func @classifier_kernel(%arg0: i32, %arg1: memref<2x1024xf32, #tpu.memory_space<vmem>>, %arg2: memref<1024x128xbf16, #tpu.memory_space<vmem>>, %arg3: memref<1x128xf32, #tpu.memory_space<vmem>>, %arg4: memref<128x128xbf16, #tpu.memory_space<vmem>>, %arg5: memref<1x128xf32, #tpu.memory_space<vmem>>, %arg6: memref<2x128xf32, #tpu.memory_space<vmem>>) attributes {dimension_semantics = [#tpu.dimension_semantics<parallel>], iteration_bounds = array<i64: 1>, scalar_prefetch = 0 : i64, scratch_operands = 0 : i64, tpu.core_type = #tpu.core_type<tc>, window_params = [{transform_indices = @transform_0, window_bounds = array<i64: 2, 1024>}, {pipeline_mode = #tpu.pipeline_mode<synchronous>, transform_indices = @transform_1, window_bounds = array<i64: 1024, 128>}, {pipeline_mode = #tpu.pipeline_mode<synchronous>, transform_indices = @transform_2, window_bounds = array<i64: 1, 128>}, {pipeline_mode = #tpu.pipeline_mode<synchronous>, transform_indices = @transform_3, window_bounds = array<i64: 128, 128>}, {pipeline_mode = #tpu.pipeline_mode<synchronous>, transform_indices = @transform_4, window_bounds = array<i64: 1, 128>}, {transform_indices = @transform_5, window_bounds = array<i64: 2, 128>}]} {
    %c0 = arith.constant 0 : index
    %c0_0 = arith.constant 0 : index
    %0 = vector.load %arg1[%c0, %c0_0] : memref<2x1024xf32, #tpu.memory_space<vmem>>, vector<2x1024xf32>
    %1 = arith.truncf %0 : vector<2x1024xf32> to vector<2x1024xbf16>
    %c0_1 = arith.constant 0 : index
    %c0_2 = arith.constant 0 : index
    %2 = vector.load %arg2[%c0_1, %c0_2] : memref<1024x128xbf16, #tpu.memory_space<vmem>>, vector<1024x128xbf16>
    %cst = arith.constant dense<0.000000e+00> : vector<2x128xf32>
    %3 = tpu.matmul %1, %2, %cst {dimension_numbers = #tpu.dot_dimension_numbers<[1], [0], [0], [1], [0, 0, 1, 1], [], []>} : vector<2x1024xbf16>, vector<1024x128xbf16>, vector<2x128xf32> -> vector<2x128xf32>
    %c0_3 = arith.constant 0 : index
    %c0_4 = arith.constant 0 : index
    %4 = vector.load %arg3[%c0_3, %c0_4] : memref<1x128xf32, #tpu.memory_space<vmem>>, vector<1x128xf32>
    %5 = vector.broadcast %4 : vector<1x128xf32> to vector<2x128xf32>
    %6 = arith.addf %3, %5 : vector<2x128xf32>
    %cst_5 = arith.constant 0.000000e+00 : f32
    %7 = vector.broadcast %cst_5 : f32 to vector<2x128xf32>
    %8 = arith.maximumf %6, %7 : vector<2x128xf32>
    %9 = arith.truncf %8 : vector<2x128xf32> to vector<2x128xbf16>
    %c0_6 = arith.constant 0 : index
    %c0_7 = arith.constant 0 : index
    %10 = vector.load %arg4[%c0_6, %c0_7] : memref<128x128xbf16, #tpu.memory_space<vmem>>, vector<128x128xbf16>
    %cst_8 = arith.constant dense<0.000000e+00> : vector<2x128xf32>
    %11 = tpu.matmul %9, %10, %cst_8 {dimension_numbers = #tpu.dot_dimension_numbers<[1], [0], [0], [1], [0, 0, 1, 1], [], []>} : vector<2x128xbf16>, vector<128x128xbf16>, vector<2x128xf32> -> vector<2x128xf32>
    %c0_9 = arith.constant 0 : index
    %c0_10 = arith.constant 0 : index
    %12 = vector.load %arg5[%c0_9, %c0_10] : memref<1x128xf32, #tpu.memory_space<vmem>>, vector<1x128xf32>
    %13 = vector.broadcast %12 : vector<1x128xf32> to vector<2x128xf32>
    %14 = arith.addf %11, %13 : vector<2x128xf32>
    %cst_11 = arith.constant dense<0xFF800000> : vector<2xf32>
    %15 = vector.multi_reduction <maximumf>, %14, %cst_11 [1] : vector<2x128xf32> to vector<2xf32>
    %16 = vector.shape_cast %15 : vector<2xf32> to vector<2x1xf32>
    %17 = vector.broadcast %16 : vector<2x1xf32> to vector<2x128xf32>
    %18 = arith.subf %14, %17 : vector<2x128xf32>
    %19 = math.exp %18 : vector<2x128xf32>
    %cst_12 = arith.constant dense<0.000000e+00> : vector<2xf32>
    %20 = vector.multi_reduction <add>, %19, %cst_12 [1] : vector<2x128xf32> to vector<2xf32>
    %21 = vector.shape_cast %20 : vector<2xf32> to vector<2x1xf32>
    %22 = math.log %21 : vector<2x1xf32>
    %23 = vector.broadcast %22 : vector<2x1xf32> to vector<2x128xf32>
    %24 = arith.subf %18, %23 : vector<2x128xf32>
    %c0_13 = arith.constant 0 : index
    %c0_14 = arith.constant 0 : index
    %25 = vector.load %arg6[%c0_13, %c0_14] : memref<2x128xf32, #tpu.memory_space<vmem>>, vector<2x128xf32>
    tpu.vector_store %arg6[%c0_13, %c0_14], %24 {strides = array<i32>} : memref<2x128xf32, #tpu.memory_space<vmem>>, vector<2x128xf32>,
    return
  }
  func.func @transform_0(%arg0: i32) -> (i32, i32) {
    %c0_i32 = arith.constant 0 : i32
    %c0_i32_0 = arith.constant 0 : i32
    return %arg0, %c0_i32 : i32, i32
  }
  func.func @transform_1(%arg0: i32) -> (i32, i32) {
    %c0_i32 = arith.constant 0 : i32
    %c0_i32_0 = arith.constant 0 : i32
    %c0_i32_1 = arith.constant 0 : i32
    return %c0_i32, %c0_i32_0 : i32, i32
  }
  func.func @transform_2(%arg0: i32) -> (i32, i32) {
    %c0_i32 = arith.constant 0 : i32
    %c0_i32_0 = arith.constant 0 : i32
    %c0_i32_1 = arith.constant 0 : i32
    return %c0_i32, %c0_i32_0 : i32, i32
  }
  func.func @transform_3(%arg0: i32) -> (i32, i32) {
    %c0_i32 = arith.constant 0 : i32
    %c0_i32_0 = arith.constant 0 : i32
    %c0_i32_1 = arith.constant 0 : i32
    return %c0_i32, %c0_i32_0 : i32, i32
  }
  func.func @transform_4(%arg0: i32) -> (i32, i32) {
    %c0_i32 = arith.constant 0 : i32
    %c0_i32_0 = arith.constant 0 : i32
    %c0_i32_1 = arith.constant 0 : i32
    return %c0_i32, %c0_i32_0 : i32, i32
  }
  func.func @transform_5(%arg0: i32) -> (i32, i32) {
    %c0_i32 = arith.constant 0 : i32
    %c0_i32_0 = arith.constant 0 : i32
    return %arg0, %c0_i32 : i32, i32
  }
}

</mosaic_0001>

<bundles_post_ra>
// kernel: tpu_custom_call.1
= control target key start
LH: loop header
LB: loop body
LE: loop exit
PB: predicated region body
PF: predicated region fallthrough
CT: control target
= control target key end

     0   :  { %10 = vsyncpa [#allocation3], 0  ;;  %s1360_s0 = inlined_call_operand.hbm [shape: f32[2,1024], index: 0, kind: input, shape index: {}]   ;;  %s1361_s1 = inlined_call_operand.hbm [shape: bf16[1024,128], index: 1, kind: input, shape index: {}]   ;;  %s1362_s2 = inlined_call_operand.vmem [shape: f32[1,128], index: 2, kind: input, shape index: {}]   ;;  %s1363_s3 = inlined_call_operand.hbm [shape: bf16[128,128], index: 3, kind: input, shape index: {}]   ;;  %s1364_s4 = inlined_call_operand.vmem [shape: f32[1,128], index: 4, kind: input, shape index: {}]   ;;  %s1365_s5 = inlined_call_operand.hbm [shape: f32[2,128], index: 5, kind: output, shape index: {}]  }
   0x1   :  { %11 = vsyncpa [#allocation6], 0  ;;  %s28_s20 = sshll.u32 %s1361_s1, 4  ;;  %s29_s20 = int_to_ptr.hbm [resolvable:$true] %s28_s20 }
   0x2   :  { %12 = vsyncpa [#allocation4], 0  ;;  %s1306_s21 = smov [#allocation5]   ;;  %s18_s25 = sshll.u32 %s1360_s0, 4  ;;  %s19_s25 = int_to_ptr.hbm [resolvable:$true] %s18_s25 }
   0x3   :  { %s30_s22 = sshll.u32 %s1306_s21, 4  ;;  %s1307_s26 = smov 64   ;;  %s31_s22 = int_to_ptr.vmem [resolvable:$true] %s30_s22 }
   0x4   :  { %s1308_s27 = smov 4   ;;  %s1309_s28 = smov [#allocation2]  }
   0x5   :  { %36 = dma.hbm_to_vmem [thread:$0]  %s29_s20, 8192, %s31_s22, [#allocation6], %s1307_s26, %s1307_s26, %s1308_s27  }
   0x6   :  { %s20_s29 = sshll.u32 %s1309_s28, 4  ;;  %s43_s7 = sshll.u32 %s1363_s3, 4  ;;  %s21_s29 = int_to_ptr.vmem [resolvable:$true] %s20_s29  ;;  %s44_s7 = int_to_ptr.hbm [resolvable:$true] %s43_s7 }
   0x7   :  { %23 = dma.hbm_to_vmem [thread:$0]  %s19_s25, 256, %s21_s29, [#allocation3]  }
   0x8   :  { %s1310_s1 = smov [#allocation7]  }
   0x9   :  { %s45_s8 = sshll.u32 %s1310_s1, 4  ;;  %s46_s8 = int_to_ptr.vmem [resolvable:$true] %s45_s8 }
   0xa   :  { %51 = dma.hbm_to_vmem [thread:$0]  %s44_s7, 1024, %s46_s8, [#allocation6], %s1307_s26, %s1307_s26, %s1308_s27  }
   0xb   :  { %1300 = dma.done.wait [#allocation3], 256  }
   0xc   :  { %1301 = vsyncadd [#allocation3], 4294967040 }
   0xd   :  { %1302 = dma.done.wait [#allocation6], 9216  }
   0xe   :  { %1303 = vsyncadd [#allocation6], 4294958080  ;;  %v1127_v0 = vld [vmem:[#allocation5 + $0x38] sm:$0xff]  ;;  %v1126_v4 = vld [vmem:[#allocation5 + $0x30] sm:$0xff]  ;;  %vm800_vm0 = vcmask 1041408   ;;  %s1311_s10 = smov [#allocation8]  }
   0xf   :  { %v1135_v1 = vld [vmem:[#allocation5 + $0x78] sm:$0xff]  ;;  %613 = vmatpush.bf16.msra.mxu0 %v1127_v0  ;;  %v1134_v5 = vld [vmem:[#allocation5 + $0x70] sm:$0xff]  ;;  %v1125_v8 = vld [vmem:[#allocation5 + $0x28] sm:$0xff]  ;;  %s819_s11 = sshll.u32 %s1311_s10, 4  ;;  %s821_s13 = sshll.u32 %s1365_s5, 4  ;;  %s820_s11 = int_to_ptr.vmem [resolvable:$true] %s819_s11  ;;  %s822_s13 = int_to_ptr.hbm [resolvable:$true] %s821_s13 }
  0x10   :  { %v1143_v2 = vld [vmem:[#allocation5 + $0xb8] sm:$0xff]  ;;  %626 = vmatpush.bf16.msra.mxu1 %v1135_v1  ;;  %v1142_v6 = vld [vmem:[#allocation5 + $0xb0] sm:$0xff]  ;;  %v1133_v9 = vld [vmem:[#allocation5 + $0x68] sm:$0xff] }
  0x11   :  { %v1151_v3 = vld [vmem:[#allocation5 + $0xf8] sm:$0xff]  ;;  %639 = vmatpush.bf16.msra.mxu2 %v1143_v2  ;;  %v1150_v7 = vld [vmem:[#allocation5 + $0xf0] sm:$0xff]  ;;  %v1141_v10 = vld [vmem:[#allocation5 + $0xa8] sm:$0xff] }
  0x12   :  { %652 = vmatpush.bf16.msra.mxu3 %v1151_v3  ;;  %v1149_v11 = vld [vmem:[#allocation5 + $0xe8] sm:$0xff]  ;;  %v1124_v12 = vld [vmem:[#allocation5 + $0x20] sm:$0xff]  ;;  %v66_v16 = vld [vmem:[#allocation2] sm:$0xff] }
  0x13   :  { %614 = vmatpush.bf16.msra.mxu0 %v1126_v4  ;;  %v1132_v13 = vld [vmem:[#allocation5 + $0x60] sm:$0xff]  ;;  %v1123_v17 = vld [vmem:[#allocation5 + $0x18] sm:$0xff]  ;;  %70 = vst [vmem:[#allocation1] ss:$4 sm:$0xff] %v66_v16  ;;  %v1122_v21 = vld [vmem:[#allocation5 + $0x10] sm:$0xff] }
  0x14   :  { %627 = vmatpush.bf16.msra.mxu1 %v1134_v5  ;;  %v1140_v14 = vld [vmem:[#allocation5 + $0xa0] sm:$0xff]  ;;  %v1131_v18 = vld [vmem:[#allocation5 + $0x58] sm:$0xff]  ;;  %v1130_v22 = vld [vmem:[#allocation5 + $0x50] sm:$0xff] }
  0x15   :  { %640 = vmatpush.bf16.msra.mxu2 %v1142_v6  ;;  %v1148_v15 = vld [vmem:[#allocation5 + $0xe0] sm:$0xff]  ;;  %v1139_v19 = vld [vmem:[#allocation5 + $0x98] sm:$0xff]  ;;  %v1138_v23 = vld [vmem:[#allocation5 + $0x90] sm:$0xff] }
  0x16   :  { %653 = vmatpush.bf16.msra.mxu3 %v1150_v7  ;;  %v1147_v20 = vld [vmem:[#allocation5 + $0xd8] sm:$0xff]  ;;  %v1146_v24 = vld [vmem:[#allocation5 + $0xd0] sm:$0xff]  ;;  %v1121_v25 = vld [vmem:[#allocation5 + $0x8] sm:$0xff] }
  0x17   :  { %615 = vmatpush.bf16.msra.mxu0 %v1125_v8  ;;  %v1129_v26 = vld [vmem:[#allocation5 + $0x48] sm:$0xff]  ;;  %v67_v29 = vld [vmem:[#allocation2 + $0x8] sm:$0xff]  ;;  %v1120_v30 = vld [vmem:[#allocation5] sm:$0xff] }
  0x18   :  { %628 = vmatpush.bf16.msra.mxu1 %v1133_v9  ;;  %v1137_v27 = vld [vmem:[#allocation5 + $0x88] sm:$0xff]  ;;  %v1128_v31 = vld [vmem:[#allocation5 + $0x40] sm:$0xff]  ;;  %72 = vst [vmem:[#allocation1 + $0x20] ss:$4 sm:$0xff] %v67_v29  ;;  %v1159_v34 = vld [vmem:[#allocation5 + $0x138] sm:$0xff] }
  0x19   :  { %641 = vmatpush.bf16.msra.mxu2 %v1141_v10  ;;  %v1145_v28 = vld [vmem:[#allocation5 + $0xc8] sm:$0xff]  ;;  %v1136_v32 = vld [vmem:[#allocation5 + $0x80] sm:$0xff]  ;;  %v1167_v35 = vld [vmem:[#allocation5 + $0x178] sm:$0xff] }
  0x1a   :  { %654 = vmatpush.bf16.msra.mxu3 %v1149_v11  ;;  %v1144_v33 = vld [vmem:[#allocation5 + $0xc0] sm:$0xff]  ;;  %v75_v36 = vld.sshfl [vmem:[#allocation1 + $0x10] sm:$0xff pattern:$0x73625140]  ;;  %v1158_v46 = vld [vmem:[#allocation5 + $0x130] sm:$0xff] }
  0x1b   :  { %616 = vmatpush.bf16.msra.mxu0 %v1124_v12  ;;  %v73_v37 = vld.sshfl [vmem:[#allocation1] sm:$0xff pattern:$0x73625140]  ;;  %v76_v38 = vld.sshfl [vmem:[#allocation1 + $0x18] sm:$0xff pattern:$0x73625140]  ;;  %v91_v42 = vpack.c.bf16 %v75_v36, %v75_v36 }
  0x1c   :  { %629 = vmatpush.bf16.msra.mxu1 %v1132_v13  ;;  %v74_v39 = vld.sshfl [vmem:[#allocation1 + $0x8] sm:$0xff pattern:$0x73625140]  ;;  %v1175_v40 = vld [vmem:[#allocation5 + $0x1b8] sm:$0xff]  ;;  %v89_v43 = vpack.c.bf16 %v73_v37, %v73_v37  ;;  %v92_v44 = vpack.c.bf16 %v76_v38, %v76_v38  ;;  %v1157_v50 = vld [vmem:[#allocation5 + $0x128] sm:$0xff] }
  0x1d   :  { %642 = vmatpush.bf16.msra.mxu2 %v1140_v14  ;;  %v1183_v41 = vld [vmem:[#allocation5 + $0x1f8] sm:$0xff]  ;;  %v90_v45 = vpack.c.bf16 %v74_v39, %v74_v39  ;;  %v1166_v47 = vld [vmem:[#allocation5 + $0x170] sm:$0xff]  ;;  %v1165_v51 = vld [vmem:[#allocation5 + $0x168] sm:$0xff] }
  0x1e   :  { %655 = vmatpush.bf16.msra.mxu3 %v1148_v15  ;;  %v1174_v48 = vld [vmem:[#allocation5 + $0x1b0] sm:$0xff]  ;;  %v1173_v52 = vld [vmem:[#allocation5 + $0x1a8] sm:$0xff]  ;;  %v1156_v54 = vld [vmem:[#allocation5 + $0x120] sm:$0xff] }
  0x1f   :  { %617 = vmatpush.bf16.msra.mxu0 %v1123_v17  ;;  %v1182_v49 = vld [vmem:[#allocation5 + $0x1f0] sm:$0xff]  ;;  %v1181_v53 = vld [vmem:[#allocation5 + $0x1e8] sm:$0xff]  ;;  %v1164_v55 = vld [vmem:[#allocation5 + $0x160] sm:$0xff] }
  0x20   :  { %630 = vmatpush.bf16.msra.mxu1 %v1131_v18  ;;  %v1172_v56 = vld [vmem:[#allocation5 + $0x1a0] sm:$0xff]  ;;  %v1155_v58 = vld [vmem:[#allocation5 + $0x118] sm:$0xff]  ;;  %v1154_v62 = vld [vmem:[#allocation5 + $0x110] sm:$0xff] }
  0x21   :  { %643 = vmatpush.bf16.msra.mxu2 %v1139_v19  ;;  %v1180_v57 = vld [vmem:[#allocation5 + $0x1e0] sm:$0xff]  ;;  %v1163_v59 = vld [vmem:[#allocation5 + $0x158] sm:$0xff]  ;;  %v1162_v63 = vld [vmem:[#allocation5 + $0x150] sm:$0xff] }
  0x22   :  { %656 = vmatpush.bf16.msra.mxu3 %v1147_v20  ;;  %v1171_v60 = vld [vmem:[#allocation5 + $0x198] sm:$0xff]  ;;  %v1170_v0 = vld [vmem:[#allocation5 + $0x190] sm:$0xff]  ;;  %v1153_v2 = vld [vmem:[#allocation5 + $0x108] sm:$0xff] }
  0x23   :  { %618 = vmatpush.bf16.msra.mxu0 %v1122_v21  ;;  %v1179_v61 = vld [vmem:[#allocation5 + $0x1d8] sm:$0xff]  ;;  %v1178_v1 = vld [vmem:[#allocation5 + $0x1d0] sm:$0xff]  ;;  %v1161_v3 = vld [vmem:[#allocation5 + $0x148] sm:$0xff] }
  0x24   :  { %631 = vmatpush.bf16.msra.mxu1 %v1130_v22  ;;  %v1169_v4 = vld [vmem:[#allocation5 + $0x188] sm:$0xff]  ;;  %v1152_v6 = vld [vmem:[#allocation5 + $0x100] sm:$0xff]  ;;  %v78_v11 = vld.sshfl [vmem:[#allocation1 + $0x28] sm:$0xff pattern:$0x73625140] }
  0x25   :  { %644 = vmatpush.bf16.msra.mxu2 %v1138_v23  ;;  %v1177_v5 = vld [vmem:[#allocation5 + $0x1c8] sm:$0xff]  ;;  %v1160_v7 = vld [vmem:[#allocation5 + $0x140] sm:$0xff]  ;;  %v79_v12 = vld.sshfl [vmem:[#allocation1 + $0x30] sm:$0xff pattern:$0x73625140]  ;;  %v94_v15 = vpack.c.bf16 %v78_v11, %v78_v11 }
  0x26   :  { %657 = vmatpush.bf16.msra.mxu3 %v1146_v24  ;;  %v1168_v8 = vld [vmem:[#allocation5 + $0x180] sm:$0xff]  ;;  %v77_v10 = vld.sshfl [vmem:[#allocation1 + $0x20] sm:$0xff pattern:$0x73625140]  ;;  %v95_v16 = vpack.c.bf16 %v79_v12, %v79_v12  ;;  %v1191_v18 = vld [vmem:[#allocation7 + $0x38] sm:$0xff] }
  0x27   :  { %619 = vmatpush.bf16.msra.mxu0 %v1121_v25  ;;  %v1176_v9 = vld [vmem:[#allocation5 + $0x1c0] sm:$0xff]  ;;  %v93_v14 = vpack.c.bf16 %v77_v10, %v77_v10  ;;  %v1190_v19 = vld [vmem:[#allocation7 + $0x30] sm:$0xff]  ;;  %v1189_v20 = vld [vmem:[#allocation7 + $0x28] sm:$0xff] }
  0x28   :  { %632 = vmatpush.bf16.msra.mxu1 %v1129_v26  ;;  %v80_v13 = vld.sshfl [vmem:[#allocation1 + $0x38] sm:$0xff pattern:$0x73625140]  ;;  %v1187_v22 = vld [vmem:[#allocation7 + $0x18] sm:$0xff]  ;;  %v1186_v24 = vld [vmem:[#allocation7 + $0x10] sm:$0xff] }
  0x29   :  { %645 = vmatpush.bf16.msra.mxu2 %v1137_v27  ;;  %v96_v17 = vpack.c.bf16 %v80_v13, %v80_v13  ;;  %v1188_v21 = vld [vmem:[#allocation7 + $0x20] sm:$0xff]  ;;  %v1185_v26 = vld [vmem:[#allocation7 + $0x8] sm:$0xff] }
  0x2a   :  { %658 = vmatpush.bf16.msra.mxu3 %v1145_v28 }
  0x2b   :  { %620 = vmatpush.bf16.msra.mxu0 %v1120_v30  ;;  %v1184_v30 = vld [vmem:[#allocation7] sm:$0xff] }
  0x2c   :  { %633 = vmatpush.bf16.msra.mxu1 %v1128_v31 }
  0x2d   :  { %646 = vmatpush.bf16.msra.mxu2 %v1136_v32  ;;  %v1198_v32 = vld [vmem:[%s1362_s2] ss:$0 sm:$0xff] }
  0x2e   :  { %659 = vmatpush.bf16.msra.mxu3 %v1144_v33  ;;  %621 = vmatmul.bf16.vlgmr.msra.gmra.mxu0 %v89_v43 }
  0x2f   :  { %665 = vmatpush.bf16.msrb.mxu0 %v1159_v34  ;;  %634 = vmatmul.bf16.vlgmr.msra.gmra.mxu1 %v90_v45 }
  0x30   :  { %678 = vmatpush.bf16.msrb.mxu1 %v1167_v35  ;;  %647 = vmatmul.bf16.vlgmr.msra.gmra.mxu2 %v91_v42 }
  0x31   :  { %691 = vmatpush.bf16.msrb.mxu2 %v1175_v40  ;;  %660 = vmatmul.bf16.vlgmr.msra.gmra.mxu3 %v92_v44 }
  0x32   :  { %704 = vmatpush.bf16.msrb.mxu3 %v1183_v41 }
  0x33   :  { %666 = vmatpush.bf16.msrb.mxu0 %v1158_v46 }
  0x34   :  { %679 = vmatpush.bf16.msrb.mxu1 %v1166_v47 }
  0x35   :  { %692 = vmatpush.bf16.msrb.mxu2 %v1174_v48 }
  0x36   :  { %705 = vmatpush.bf16.msrb.mxu3 %v1182_v49 }
  0x37   :  { %667 = vmatpush.bf16.msrb.mxu0 %v1157_v50 }
  0x38   :  { %680 = vmatpush.bf16.msrb.mxu1 %v1165_v51 }
  0x39   :  { %693 = vmatpush.bf16.msrb.mxu2 %v1173_v52 }
  0x3a   :  { %706 = vmatpush.bf16.msrb.mxu3 %v1181_v53  ;;  %v1199_v53 = vld [vmem:[%s1364_s4] ss:$0 sm:$0xff] }
  0x3b   :  { %668 = vmatpush.bf16.msrb.mxu0 %v1156_v54 }
  0x3c   :  { %681 = vmatpush.bf16.msrb.mxu1 %v1164_v55 }
  0x3d   :  { %694 = vmatpush.bf16.msrb.mxu2 %v1172_v56 }
  0x3e   :  { %707 = vmatpush.bf16.msrb.mxu3 %v1180_v57 }
  0x3f   :  { %669 = vmatpush.bf16.msrb.mxu0 %v1155_v58 }
  0x40   :  { %682 = vmatpush.bf16.msrb.mxu1 %v1163_v59 }
  0x41   :  { %695 = vmatpush.bf16.msrb.mxu2 %v1171_v60 }
  0x42   :  { %708 = vmatpush.bf16.msrb.mxu3 %v1179_v61 }
  0x43   :  { %670 = vmatpush.bf16.msrb.mxu0 %v1154_v62 }
  0x44   :  { %683 = vmatpush.bf16.msrb.mxu1 %v1162_v63 }
  0x45   :  { %696 = vmatpush.bf16.msrb.mxu2 %v1170_v0 }
  0x46   :  { %709 = vmatpush.bf16.msrb.mxu3 %v1178_v1 }
  0x47   :  { %671 = vmatpush.bf16.msrb.mxu0 %v1153_v2 }
  0x48   :  { %684 = vmatpush.bf16.msrb.mxu1 %v1161_v3 }
  0x49   :  { %697 = vmatpush.bf16.msrb.mxu2 %v1169_v4 }
  0x4a   :  { %710 = vmatpush.bf16.msrb.mxu3 %v1177_v5 }
  0x4b   :  { %672 = vmatpush.bf16.msrb.mxu0 %v1152_v6 }
  0x4c   :  { %685 = vmatpush.bf16.msrb.mxu1 %v1160_v7 }
  0x4d   :  { %698 = vmatpush.bf16.msrb.mxu2 %v1168_v8 }
  0x4e   :  { %711 = vmatpush.bf16.msrb.mxu3 %v1176_v9  ;;  %673 = vmatmul.bf16.vlgmr.msrb.gmra.mxu0 %v93_v14 }
  0x4f   :  { %686 = vmatmul.bf16.vlgmr.msrb.gmra.mxu1 %v94_v15  ;;  %787 = vmatpush.bf16.msra.mxu0 %v1191_v18 }
  0x50   :  { %699 = vmatmul.bf16.vlgmr.msrb.gmra.mxu2 %v95_v16 }
  0x51   :  { %712 = vmatmul.bf16.vlgmr.msrb.gmra.mxu3 %v96_v17 }
  0x53   :  { %788 = vmatpush.bf16.msra.mxu0 %v1190_v19 }
  0x57   :  { %789 = vmatpush.bf16.msra.mxu0 %v1189_v20 }
  0x5b   :  { %790 = vmatpush.bf16.msra.mxu0 %v1188_v21 }
  0x5f   :  { %791 = vmatpush.bf16.msra.mxu0 %v1187_v22 }
  0x63   :  { %792 = vmatpush.bf16.msra.mxu0 %v1186_v24 }
  0x67   :  { %793 = vmatpush.bf16.msra.mxu0 %v1185_v26 }
  0x6b   :  { %794 = vmatpush.bf16.msra.mxu0 %v1184_v30 }
  0xab   :  { %v622_v23 = vpop.f32.mrf.mxu0 }
  0xac   :  { %v635_v25 = vpop.f32.mrf.mxu1  ;;  %v623_v35 = vadd.f32 %v1198_v32, %v622_v23 }
  0xae   :  { %v636_v36 = vadd.f32 %v635_v25, %v623_v35 }
  0xb3   :  { %v648_v27 = vpop.f32.mrf.mxu2  ;;  %v624_v29 = vpop.f32.mrf.mxu0 }
  0xb4   :  { %v661_v28 = vpop.f32.mrf.mxu3  ;;  %v637_v31 = vpop.f32.mrf.mxu1  ;;  %v649_v37 = vadd.f32 %v648_v27, %v636_v36 }
  0xb6   :  { %v662_v38 = vadd.f32 %v661_v28, %v649_v37 }
  0xbb   :  { %v650_v33 = vpop.f32.mrf.mxu2 }
  0xbc   :  { %v663_v34 = vpop.f32.mrf.mxu3 }
  0xcb   :  { %v674_v39 = vpop.f32.mrf.mxu0 }
  0xcc   :  { %v687_v40 = vpop.f32.mrf.mxu1  ;;  %v675_v41 = vadd.f32 %v674_v39, %v662_v38 }
  0xce   :  { %v688_v42 = vadd.f32 %v687_v40, %v675_v41 }
  0xd3   :  { %v700_v43 = vpop.f32.mrf.mxu2  ;;  %v676_v46 = vpop.f32.mrf.mxu0 }
  0xd4   :  { %v713_v44 = vpop.f32.mrf.mxu3  ;;  %v701_v45 = vadd.f32 %v700_v43, %v688_v42  ;;  %v689_v47 = vpop.f32.mrf.mxu1 }
  0xd6   :  { %v714_v48 = vadd.f32 %v713_v44, %v701_v45 }
  0xd8   :  { %v717_v49 = vmax.f32 %v714_v48, 0.0 }
  0xda   :  { %v718_v50 = vpack.c.bf16 %v717_v49, %v717_v49 }
  0xdb   :  { %v702_v51 = vpop.f32.mrf.mxu2 }
  0xdc   :  { %v715_v52 = vpop.f32.mrf.mxu3  ;;  %795 = vmatmul.bf16.vlgmr.msra.gmra.mxu0 %v718_v50 }
 0x159   :  { %v796_v54 = vpop.f32.mrf.mxu0 }
 0x15a   :  { %v797_v55 = vadd.f32 %v1199_v53, %v796_v54 }
 0x15c   :  { %v801_v56 = vsel %vm800_vm0, %v797_v55, -inf }
 0x15d   :  { %802 = vmax.xlane.f32.xlu0 %v801_v56 }
 0x161   :  { %v798_v57 = vpop.f32.mrf.mxu0 }
 0x1d0   :  { %v803_v58 = vpop.xlane.xlu0 %802 }
 0x1d1   :  { %v804_v59 = vsub.f32 %v797_v55, %v803_v58 }
 0x1d3   :  { %v805_v60 = vmul.f32 1.442695, %v804_v59 }
 0x1d5   :  { %1200 = vpow2.f32 %v805_v60 }
 0x1db   :  { %v1201_v61 = vpop.eup %1200 }
 0x1dc   :  { %v807_v62 = vsel %vm800_vm0, %v1201_v61, 0.0 }
 0x1dd   :  { %808 = vadd.xlane.f32.xlu0 %v807_v62 }
 0x250   :  { %v809_v63 = vpop.xlane.xlu0 %808 }
 0x251   :  { %1202 = vlog2.f32 %v809_v63 }
 0x257   :  { %v1203_v0 = vpop.eup %1202 }
 0x258   :  { %v811_v1 = vmul.f32 0.6931472, %v1203_v0 }
 0x25a   :  { %v812_v2 = vsub.f32 %v804_v59, %v811_v1 }
 0x25c   :  { %813 = vst [vmem:[#allocation8] sm:$0x3] %v812_v2 }
 0x25d   :  { %824 = dma.vmem_to_hbm [thread:$0]  %s820_s11, 32, %s822_s13, [#allocation4]  }
 0x25e   :  { %1304 = dma.done.wait [#allocation4], 32  }
 0x25f   :  { %1305 = vsyncadd [#allocation4], 4294967264 }
 0x260   :  { %829 = vsyncpa [#allocation3], 1 }
 0x261   :  { %830 = vsyncpa [#allocation6], 1 }
 0x262   :  { %831 = vsyncpa [#allocation4], 1 }

</bundles_post_ra>
